<compile_context>
chip_gen: v7x
topology: tpu7x:2x2x1
jax: 0.10.0
libtpu: 0.0.40
codegen_flags: <defaults>
</compile_context>

<pallas_src>
from typing import Any, Dict

import jax
import jax.numpy as jnp
from jax.experimental import pallas as pl
from jax.experimental.pallas import tpu as pltpu


# -----------------------------------------------------------------------------
# Primary pass-through: one HBM -> HBM async DMA (optimal for a pure copy).
# -----------------------------------------------------------------------------
def _dma_copy_kernel(x_hbm, o_hbm, copy_sem):
    cp = pltpu.make_async_copy(x_hbm, o_hbm, copy_sem)
    cp.start()
    cp.wait()


def _dma_passthrough(x: jnp.ndarray) -> jnp.ndarray:
    """Whole-tensor copy via a single DMA; accepts any shape/dtype."""
    return pl.pallas_call(
        _dma_copy_kernel,
        out_shape=jax.ShapeDtypeStruct(x.shape, x.dtype),
        in_specs=[pl.BlockSpec(memory_space=pl.ANY)],
        out_specs=pl.BlockSpec(memory_space=pl.ANY),
        scratch_shapes=[pltpu.SemaphoreType.DMA(())],
    )(x)


# -----------------------------------------------------------------------------
# Secondary path: tiled VMEM pipeline skeleton (what a concrete subclass's
# real forward would build on).  Lane-dense slab, big blocks, cdiv grid,
# no padding, no aliasing.
# -----------------------------------------------------------------------------
_TARGET_BLOCK_BYTES = 8 * 1024 * 1024   # 8 MiB blocks: <~6% step overhead even
                                        # at v7x's ~3.2 TB/s HBM.
_VMEM_LIMIT_BYTES = 48 * 1024 * 1024    # 4 x 8 MiB (in+out, double-buffered)
                                        # needs more than the 32 MiB default
                                        # scoped limit; 48 MiB < 64 MiB (v7x).


def _copy_tile_kernel(x_ref, o_ref):
    o_ref[...] = x_ref[...]


def _pick_lanes(total: int) -> int:
    """Widest lane-dense last dim (multiple of 128) dividing `total`, else 0."""
    for cand in (8192, 4096, 2048, 1024, 512, 256, 128):
        if total % cand == 0:
            return cand
    return 0


def _sublane_multiple(dtype) -> int:
    itemsize = jnp.dtype(dtype).itemsize
    return {1: 32, 2: 16}.get(itemsize, 8)


def _tiled_copy(x2d: jnp.ndarray, block_rows: int) -> jnp.ndarray:
    R, C = x2d.shape
    return pl.pallas_call(
        _copy_tile_kernel,
        out_shape=jax.ShapeDtypeStruct((R, C), x2d.dtype),
        grid=(pl.cdiv(R, block_rows),),          # ragged edge handled by Pallas
        in_specs=[pl.BlockSpec((block_rows, C), lambda i: (i, 0))],
        out_specs=pl.BlockSpec((block_rows, C), lambda i: (i, 0)),
        compiler_params=pltpu.CompilerParams(
            dimension_semantics=("parallel",),
            vmem_limit_bytes=_VMEM_LIMIT_BYTES,
        ),
    )(x2d)


def _tiled_passthrough(x: jnp.ndarray) -> jnp.ndarray:
    shape = x.shape
    total = int(x.size)
    lanes = _pick_lanes(total)
    if lanes == 0:
        # Ragged element count: the single-DMA path is strictly better than
        # padding + slicing, so just use it.
        return _dma_passthrough(x)
    rows = total // lanes
    x2d = x.reshape(rows, lanes)

    itemsize = jnp.dtype(x.dtype).itemsize
    sub = _sublane_multiple(x.dtype)
    max_rows = max(sub, (_TARGET_BLOCK_BYTES // (lanes * itemsize)) // sub * sub)
    # Single block (block dims == array dims) when it fits; otherwise big
    # sublane-aligned blocks with a cdiv grid (no array padding needed).
    block_rows = rows if rows <= max_rows else max_rows

    y2d = _tiled_copy(x2d, block_rows)
    return y2d.reshape(shape)


# One compiled executable per shape/dtype; removes eager dispatch overhead.
_dma_passthrough_jit = jax.jit(_dma_passthrough)
_tiled_passthrough_jit = jax.jit(_tiled_passthrough)


# -----------------------------------------------------------------------------
# BaseNetwork mirror (JAX side).
# -----------------------------------------------------------------------------
class BaseNetworkPallas:
    """Base network class which all networks inherit (JAX/Pallas mirror)."""

    def __init__(self):
        # The PyTorch base class registers no parameters; only a logger.
        # TODO(synk): color_logger has no device-side equivalent; omitted.
        self.params: Dict[str, jnp.ndarray] = {}

    @classmethod
    def _from_config(cls, config: Dict[str, Any]) -> "BaseNetworkPallas":
        # TODO(synk): config-driven class dispatch (getattr on a models package)
        # has no kernel equivalent; kept as a plain-Python stub.
        raise KeyError(
            f"Cannot find {config.get('type')} class in this synthetic script."
        )

    def _count_parameters(self) -> str:
        """Counting number of model parameters."""
        num_params = sum(int(p.size) for p in self.params.values())
        return f"{num_params:,}"

    def forward(self):
        """Forwarding process (abstract in the PyTorch base class)."""
        raise NotImplementedError

    # Device-side pass-through a concrete subclass would replace with its real
    # Pallas forward.  Single HBM->HBM DMA; accepts any shape/dtype.
    def passthrough(self, x: jnp.ndarray) -> jnp.ndarray:
        return _dma_passthrough_jit(x)

    # Tiled VMEM pipeline variant: the skeleton a subclass with real per-tile
    # compute would extend.
    def passthrough_tiled(self, x: jnp.ndarray) -> jnp.ndarray:
        return _tiled_passthrough_jit(x)


# -----------------------------------------------------------------------------
# Demo / smoke test.
# -----------------------------------------------------------------------------
if __name__ == "__main__":
    key = jax.random.PRNGKey(0)
    net = BaseNetworkPallas()

    # Base class has zero trainable parameters.
    assert net._count_parameters() == "0"

    # The abstract forward must raise, exactly like the PyTorch module.
    try:
        net.forward()
        raise AssertionError("BaseNetwork.forward should raise NotImplementedError")
    except NotImplementedError:
        pass

    # Aligned NCHW input consistent with a conv-style network: (2, 4, 16, 16).
    x = jax.random.normal(key, (2, 4, 16, 16), dtype=jnp.float32)
    y = jax.block_until_ready(net.passthrough(x))
    assert y.shape == x.shape and y.dtype == x.dtype
    assert bool(jnp.all(y == x))

    # Ragged shape: the DMA path needs no padding or slicing.
    x_ragged = jax.random.normal(jax.random.PRNGKey(1), (2, 3, 5, 7),
                                 dtype=jnp.float32)
    y_ragged = jax.block_until_ready(net.passthrough(x_ragged))
    assert y_ragged.shape == x_ragged.shape
    assert bool(jnp.all(y_ragged == x_ragged))

    # bf16 case through the DMA path.
    x_bf16 = jax.random.normal(jax.random.PRNGKey(2), (4, 8, 16, 16),
                               dtype=jnp.bfloat16)
    y_bf16 = jax.block_until_ready(net.passthrough(x_bf16))
    assert y_bf16.shape == x_bf16.shape and y_bf16.dtype == x_bf16.dtype
    assert bool(jnp.all(y_bf16 == x_bf16))

    # Tiled-pipeline skeleton (subclass-compute path), f32 and bf16.
    y_t = jax.block_until_ready(net.passthrough_tiled(x))
    assert y_t.shape == x.shape and y_t.dtype == x.dtype
    assert bool(jnp.all(y_t == x))

    y_t_bf16 = jax.block_until_ready(net.passthrough_tiled(x_bf16))
    assert y_t_bf16.shape == x_bf16.shape and y_t_bf16.dtype == x_bf16.dtype
    assert bool(jnp.all(y_t_bf16 == x_bf16))

    print("KERNEL_OK")
</pallas_src>

<mosaic_0001>
module attributes {stable_mosaic.version = 11 : i64} {
  func.func @_dma_copy_kernel(%arg0: memref<2x4x16x16xf32, #tpu.memory_space<any>>, %arg1: memref<2x4x16x16xf32, #tpu.memory_space<any>>, %arg2: memref<!tpu.dma_semaphore, #tpu.memory_space<semaphore_mem>>) attributes {dimension_semantics = [], scalar_prefetch = 0 : i64, scratch_operands = 1 : i64, tpu.core_type = #tpu.core_type<tc>} {
    tpu.enqueue_dma source(%arg0 : memref<2x4x16x16xf32, #tpu.memory_space<any>>) target(%arg1 : memref<2x4x16x16xf32, #tpu.memory_space<any>>) target_semaphore(%arg2 : memref<!tpu.dma_semaphore, #tpu.memory_space<semaphore_mem>>)
    tpu.wait_dma2 semaphore(%arg2 : memref<!tpu.dma_semaphore, #tpu.memory_space<semaphore_mem>>) src(%arg0 : memref<2x4x16x16xf32, #tpu.memory_space<any>>) dst(%arg1 : memref<2x4x16x16xf32, #tpu.memory_space<any>>)
    return
  }
}

</mosaic_0001>

<bundles_post_ra>
// kernel: _dma_passthrough.1
= control target key start
LH: loop header
LB: loop body
LE: loop exit
PB: predicated region body
PF: predicated region fallthrough
CT: control target
= control target key end

     0   :  { %s36_s6 = smov [#allocation2]   ;;  %s37_s7 = smov [#allocation3]   ;;  %s55_s0 = inlined_call_operand.hbm [shape: f32[2,4,16,16], index: 0, kind: input, shape index: {}]   ;;  %s56_s1 = inlined_call_operand.hbm [shape: f32[2,4,16,16], index: 1, kind: output, shape index: {}]  }
   0x1   :  { %s38_s8 = smov 0  }
   0x2   :  { %18 = dma.general %s55_s0, 2048, %s56_s1, %s36_s6, %s37_s7, [#allocation4], %s38_s8, 0  }
   0x3   :  { %34 = dma.done.wait [#allocation2], 2048 }
   0x4   :  { %35 = vsyncadd [#allocation2], 4294965248 }
   0x5   :  { %24 = vsyncmov [#allocation2] }
   0x8   :  { %s25_s13 = vpop.sfrf %24 }
   0x9   :  { %p30_p0 = scmp.ne.s32.totalorder %s25_s13, 0 }
   0xb   :  { %29 = shalt.err (%p30_p0)  }

</bundles_post_ra>
